<compile_context>
chip_gen: v7x
topology: tpu7x:2x2x1
jax: 0.10.0
libtpu: 0.0.40
codegen_flags: <defaults>
</compile_context>

<pallas_src>
import jax
import jax.numpy as jnp
from jax.experimental import pallas as pl
from jax.experimental.pallas import tpu as pltpu

LANES = 128        # vreg lane width; last dim of the lane-dense slab
MAX_TILE_R = 2048  # rows per grid step: 2048 * 128 * 4 B = 1 MiB per f32 buffer


def _linreg_kernel(wb_ref, x_ref, o_ref):
    # wb_ref: SMEM (2,) f32 -> [w, b]
    # x_ref : VMEM (tile_r, 128) tile of the lane-dense input slab
    # o_ref : VMEM (tile_r, 128) matching output tile
    w = wb_ref[0]
    b = wb_ref[1]
    # Scalar-broadcast VPU FMA; accumulate in f32, cast back to output dtype.
    o_ref[...] = (x_ref[...].astype(jnp.float32) * w + b).astype(o_ref.dtype)


def _run_slab(slab: jax.Array, wb: jax.Array) -> jax.Array:
    """Run y = w*x + b over a lane-dense (rows, 128) slab."""
    rows, lanes = slab.shape
    dtype = slab.dtype
    # Block equals the full sublane extent when rows is small (always valid),
    # otherwise a 2048-row block (multiple of 8); last block may be partial.
    tile_r = min(MAX_TILE_R, rows)
    grid = (pl.cdiv(rows, tile_r),)
    nbytes = rows * lanes * jnp.dtype(dtype).itemsize

    return pl.pallas_call(
        _linreg_kernel,
        out_shape=jax.ShapeDtypeStruct((rows, lanes), dtype),
        grid=grid,
        in_specs=[
            pl.BlockSpec(memory_space=pltpu.MemorySpace.SMEM),  # wb (2,)
            pl.BlockSpec((tile_r, lanes), lambda i: (i, 0)),    # x slab tile
        ],
        out_specs=pl.BlockSpec((tile_r, lanes), lambda i: (i, 0)),
        compiler_params=pltpu.CompilerParams(
            # Only affects multi-TC parts (v7x); measured no-op on v5e/v6e.
            dimension_semantics=("parallel",),
            vmem_limit_bytes=32 << 20,
        ),
        cost_estimate=pl.CostEstimate(
            flops=2 * rows * lanes,
            transcendentals=0,
            bytes_accessed=2 * nbytes + 8,
        ),
    )(wb, slab)


def linear_regression(x: jax.Array, w: jax.Array, b: jax.Array) -> jax.Array:
    """Forward pass of LinearRegression: (batch, 1) -> (batch, 1)."""
    batch, in_features = x.shape
    assert in_features == 1, "LinearRegression expects (batch, 1) input"

    # Fold weight + bias into one small 1-D f32 SMEM array.
    wb = jnp.concatenate([w.reshape(-1), b.reshape(-1)]).astype(jnp.float32)

    if batch % LANES == 0:
        # Fast path: reshape is a free bitcast — no pad pass, no slice pass.
        slab = x.reshape(batch // LANES, LANES)
        out_slab = _run_slab(slab, wb)
        return out_slab.reshape(batch, 1)

    # Ragged path: pad only to the next multiple of 128 (< one lane-row of
    # waste); padded lanes compute w*0 + b and are sliced off before return.
    rows = pl.cdiv(batch, LANES)
    padded = rows * LANES
    flat = jnp.pad(x.reshape(-1), (0, padded - batch))
    slab = flat.reshape(rows, LANES)
    out_slab = _run_slab(slab, wb)
    return out_slab.reshape(-1)[:batch].reshape(batch, 1)


if __name__ == "__main__":
    key = jax.random.PRNGKey(0)
    kx, kw, kb, kx2, kx3 = jax.random.split(key, 5)

    # Deterministic parameter init matching nn.Linear(1, 1) shapes
    # (torch default: uniform(-1, 1) since fan_in == 1).
    w = jax.random.uniform(kw, (1, 1), dtype=jnp.float32, minval=-1.0, maxval=1.0)
    b = jax.random.uniform(kb, (1,), dtype=jnp.float32, minval=-1.0, maxval=1.0)

    # Small shape consistent with the module (ragged path, single block).
    batch = 8
    x = jax.random.normal(kx, (batch, 1), dtype=jnp.float32)
    out = jax.block_until_ready(linear_regression(x, w, b))
    ref = x @ w.T + b
    assert out.shape == (batch, 1)
    assert jnp.allclose(out, ref, atol=1e-6), "mismatch vs reference (batch=8)"

    # Fast path: batch is a multiple of 128 -> zero-copy reshape, no pad/slice.
    batch2 = 256
    x2 = jax.random.normal(kx2, (batch2, 1), dtype=jnp.float32)
    out2 = jax.block_until_ready(linear_regression(x2, w, b))
    ref2 = x2 @ w.T + b
    assert out2.shape == (batch2, 1)
    assert jnp.allclose(out2, ref2, atol=1e-6), "mismatch vs reference (batch=256)"

    # Ragged, multi-row slab: exercises padding to the next multiple of 128.
    batch3 = 1000
    x3 = jax.random.normal(kx3, (batch3, 1), dtype=jnp.float32)
    out3 = jax.block_until_ready(linear_regression(x3, w, b))
    ref3 = x3 @ w.T + b
    assert out3.shape == (batch3, 1)
    assert jnp.allclose(out3, ref3, atol=1e-6), "mismatch vs reference (batch=1000)"

    print("KERNEL_OK")
</pallas_src>

<mosaic_0001>
module attributes {stable_mosaic.version = 11 : i64} {
  func.func @_linreg_kernel(%arg0: i32, %arg1: memref<2xf32, #tpu.memory_space<smem>>, %arg2: memref<1x128xf32, #tpu.memory_space<vmem>>, %arg3: memref<1x128xf32, #tpu.memory_space<vmem>>) attributes {dimension_semantics = [#tpu.dimension_semantics<parallel>], iteration_bounds = array<i64: 1>, scalar_prefetch = 0 : i64, scratch_operands = 0 : i64, tpu.core_type = #tpu.core_type<tc>, window_params = [{transform_indices = @transform_0, window_bounds = array<i64: 2>}, {transform_indices = @transform_1, window_bounds = array<i64: 1, 128>}, {transform_indices = @transform_2, window_bounds = array<i64: 1, 128>}]} {
    %c0 = arith.constant 0 : index
    %0 = memref.load %arg1[%c0] : memref<2xf32, #tpu.memory_space<smem>>
    %c1 = arith.constant 1 : index
    %1 = memref.load %arg1[%c1] : memref<2xf32, #tpu.memory_space<smem>>
    %c0_0 = arith.constant 0 : index
    %c0_1 = arith.constant 0 : index
    %2 = vector.load %arg2[%c0_0, %c0_1] : memref<1x128xf32, #tpu.memory_space<vmem>>, vector<1x128xf32>
    %3 = vector.broadcast %0 : f32 to vector<1x128xf32>
    %4 = arith.mulf %2, %3 : vector<1x128xf32>
    %5 = vector.broadcast %1 : f32 to vector<1x128xf32>
    %6 = arith.addf %4, %5 : vector<1x128xf32>
    %c0_2 = arith.constant 0 : index
    %c0_3 = arith.constant 0 : index
    %7 = vector.load %arg3[%c0_2, %c0_3] : memref<1x128xf32, #tpu.memory_space<vmem>>, vector<1x128xf32>
    tpu.vector_store %arg3[%c0_2, %c0_3], %6 {strides = array<i32>} : memref<1x128xf32, #tpu.memory_space<vmem>>, vector<1x128xf32>,
    return
  }
  func.func @transform_0(%arg0: i32) -> i32 {
    %c0_i32 = arith.constant 0 : i32
    %c0_i32_0 = arith.constant 0 : i32
    return %c0_i32 : i32
  }
  func.func @transform_1(%arg0: i32) -> (i32, i32) {
    %c0_i32 = arith.constant 0 : i32
    %c0_i32_0 = arith.constant 0 : i32
    return %arg0, %c0_i32 : i32, i32
  }
  func.func @transform_2(%arg0: i32) -> (i32, i32) {
    %c0_i32 = arith.constant 0 : i32
    %c0_i32_0 = arith.constant 0 : i32
    return %arg0, %c0_i32 : i32, i32
  }
}

</mosaic_0001>

<bundles_post_ra>
// kernel: tpu_custom_call.1
= control target key start
LH: loop header
LB: loop body
LE: loop exit
PB: predicated region body
PF: predicated region fallthrough
CT: control target
= control target key end

     0   :  { %7 = vsyncpa [#allocation4], 0  ;;  %s129_s0 = inlined_call_operand.hbm [shape: f32[2], index: 0, kind: input, shape index: {}]   ;;  %s130_s1 = inlined_call_operand.vmem [shape: f32[1,128], index: 1, kind: input, shape index: {}]   ;;  %s131_s2 = inlined_call_operand.hbm [shape: f32[1,128], index: 2, kind: output, shape index: {}]  }
   0x1   :  { %8 = vsyncpa [#allocation3], 0  ;;  %s49_s11 = scalar_lea.hbm %s129_s0, 16 }
   0x2   :  { %p50_p0 = scmp.ne.s32.totalorder %s129_s0, %s49_s11  ;;  %p53_p1 = scmp.lt.u32.totalorder %s49_s11, %s129_s0 }
   0x4   :  { %p55_p2 = pnand %p53_p1, %p50_p0 }
   0x6   :  { %58 = shalt.err (!%p55_p2)
}
   0x7   :  { %s85_s16 = smov [#allocation2]  }
   0x8   :  { %16 = dma.hbm_to_smem %s129_s0, 16, %s85_s16, [#allocation4]  }
   0x9   :  { %81 = dma.done.wait [#allocation4], 16  }
   0xa   :  { %82 = vsyncadd [#allocation4], 4294967280 }
   0xb   :  { %22 = sfence }
   0xc   :  { %s23_s19 = sld [smem:[#allocation2]]  ;;  %s46_s20 = sld [smem:[#allocation2 + $0x1]]  ;;  %v25_v0 = vld [vmem:[%s130_s1] sm:$0x1] }
   0xd   :  { %s86_s23 = smov [#allocation5]  }
   0xe   :  { %s37_s24 = sshll.u32 %s86_s23, 4  ;;  %s38_s24 = int_to_ptr.vmem [resolvable:$true] %s37_s24 }
   0xf   :  { %s59_s25 = scalar_lea.vmem %s38_s24, 16  ;;  %s63_s0 = scalar_lea.vmem %s38_s24, 32 }
  0x10   :  { %p60_p3 = scmp.ne.s32.totalorder %s38_s24, %s59_s25  ;;  %p64_p4 = scmp.lt.s32.totalorder %s38_s24, %s38_s24 }
  0x11   :  { %p65_p5 = scmp.lt.s32.totalorder %s63_s0, %s59_s25 }
  0x12   :  { %v26_v1 = vstv %s23_s19  ;;  %v28_v2 = vstv %s46_s20 }
  0x13   :  { %v27_v3 = vmul.f32 %v26_v1, %v25_v0  ;;  %p66_p6 = por %p65_p5, %p64_p4 }
  0x15   :  { %v29_v4 = vadd.f32 %v28_v2, %v27_v3  ;;  %p67_p7 = pnand %p66_p6, %p60_p3 }
  0x17   :  { %30 = vst [vmem:[#allocation5] sm:$0x1] %v29_v4 }
  0x18   :  { %70 = shalt.err (!%p67_p7)
}
  0x19   :  { %s71_s1 = scalar_lea.hbm %s131_s2, 16 }
  0x1a   :  { %p72_p8 = scmp.ne.s32.totalorder %s131_s2, %s71_s1  ;;  %p75_p9 = scmp.lt.u32.totalorder %s71_s1, %s131_s2 }
  0x1c   :  { %p77_p10 = pnand %p75_p9, %p72_p8 }
  0x1e   :  { %80 = shalt.err (!%p77_p10)
}
  0x1f   :  { %40 = dma.vmem_to_hbm [thread:$0]  %s38_s24, 16, %s131_s2, [#allocation3]  }
  0x20   :  { %83 = dma.done.wait [#allocation3], 16  }
  0x21   :  { %84 = vsyncadd [#allocation3], 4294967280 }
  0x22   :  { %44 = vsyncpa [#allocation3], 1 }
  0x23   :  { %45 = vsyncpa [#allocation4], 1 }

</bundles_post_ra>
